<compile_context>
chip_gen: v7x
topology: tpu7x:2x2x1
jax: 0.10.0
libtpu: 0.0.40
codegen_flags: <defaults>
</compile_context>

<pallas_src>
import jax
import jax.numpy as jnp
import numpy as np
from jax import lax
from jax.experimental import pallas as pl
from jax.experimental.pallas import tpu as pltpu

EPS = 1e-5
PAD = 8  # sublane-aligned top pad of the H-padded scratch (only 1 halo row is read)


def _band_weights(w_oihw, W):
    """Per-ky banded conv weights for the lane-packed (W*C) layout.

    band[ky][p*Cin + ci, w*Cout + co] = w[co, ci, ky, kx]  with  p = w + kx - 1.
    Out-of-range p (the W boundary) has no entry == zero padding along W.
    """
    Cout, Cin, KH, KW = w_oihw.shape
    bands = []
    for ky in range(KH):
        band = jnp.zeros((W * Cin, W * Cout), jnp.float32)
        for kx in range(KW):
            tap = jnp.transpose(w_oihw[:, :, ky, kx]).astype(jnp.float32)  # (Cin, Cout)
            shift = jnp.eye(W, k=1 - kx, dtype=jnp.float32)                # [p, w] = (p == w+kx-1)
            band = band + jnp.kron(shift, tap)
        bands.append(band)
    return jnp.stack(bands)                                                # (3, W*Cin, W*Cout)


def conv_block_forward(x_nchw, p):
    """Pallas implementation of ConvBlock.forward (training-mode BN). NCHW in/out."""
    N, C1, H, W = x_nchw.shape
    C2 = p["w1"].shape[0]
    WC1, WC2 = W * C1, W * C2
    assert (W & (W - 1)) == 0, "lane roll-tree assumes power-of-two W"
    inv_count = 1.0 / float(N * H * W)

    # ---- wrapper-side layout plumbing (plain XLA, cheap) ----
    x3d = jnp.transpose(x_nchw, (0, 2, 3, 1)).reshape(N, H, WC1).astype(jnp.float32)
    wb1 = _band_weights(p["w1"], W).astype(jnp.bfloat16)   # (3, WC1, WC2) bf16 MXU operand
    wb2 = _band_weights(p["w2"], W).astype(jnp.bfloat16)   # (3, WC2, WC2) bf16 MXU operand

    def lanes(v):  # tile a per-channel vector across the packed lane axis
        return jnp.tile(v.reshape(1, C2).astype(jnp.float32), (1, W))      # (1, WC2)

    bn_pk = jnp.concatenate([lanes(p["g1"]), lanes(p["be1"]),
                             lanes(p["g2"]), lanes(p["be2"])], axis=0)      # (4, WC2), 1 DMA
    # NOTE: conv biases p["b1"], p["b2"] are intentionally unused — training-mode
    # BatchNorm subtracts the per-channel batch mean, which cancels them exactly.

    def kernel(x_ref, wb1_ref, wb2_ref, bn_ref, o_ref, xp1_ref, xp2_ref):

        def channel_allreduce(rows):
            # rows: (k, WC2). Sum the W channel-groups along the packed lane axis and
            # broadcast the per-channel total back to every lane via a log2(W)-step
            # XLU roll-tree (sums the full cyclic orbit -> roll direction irrelevant).
            shift = C2
            while shift < WC2:
                rows = rows + pltpu.roll(rows, shift=shift, axis=1)
                shift *= 2
            return rows

        def conv_bn_relu(x3, wb_ref, gamma, beta, xp_ref, wc_in):
            # Zero only the two halo rows the ky taps actually read; aligned interior store.
            xp_ref[:, PAD - 1:PAD, :] = jnp.zeros((N, 1, wc_in), jnp.float32)
            xp_ref[:, PAD + H:PAD + H + 1, :] = jnp.zeros((N, 1, wc_in), jnp.float32)
            xp_ref[:, PAD:PAD + H, :] = x3
            # 3x3 conv == 3 MXU matmuls (one per ky tap): bf16 operands, f32 accumulate.
            acc = None
            for ky in range(3):
                r0 = PAD - 1 + ky
                patch = xp_ref[:, r0:r0 + H, :].reshape(N * H, wc_in).astype(jnp.bfloat16)
                d = jnp.dot(patch, wb_ref[ky], preferred_element_type=jnp.float32)
                acc = d if acc is None else acc + d                         # (N*H, WC2) f32
            # BatchNorm (PyTorch training-mode: batch stats over N,H,W, biased var):
            # one pass over acc -> sum & sum-of-squares, stacked 2-row lane reduction,
            # var = E[x^2] - mean^2.
            colsum = jnp.sum(acc, axis=0, keepdims=True)                    # (1, WC2)
            sqsum = jnp.sum(acc * acc, axis=0, keepdims=True)               # (1, WC2)
            stats = channel_allreduce(
                jnp.concatenate([colsum, sqsum], axis=0)) * inv_count        # (2, WC2)
            mean_l = stats[0:1, :]
            var_l = jnp.maximum(stats[1:2, :] - mean_l * mean_l, 0.0)
            scale_l = gamma * lax.rsqrt(var_l + EPS)
            return jnp.maximum((acc - mean_l) * scale_l + beta, 0.0)        # (N*H, WC2) f32

        y1 = conv_bn_relu(x_ref[...], wb1_ref, bn_ref[0:1, :], bn_ref[1:2, :], xp1_ref, WC1)
        y2 = conv_bn_relu(y1.reshape(N, H, WC2), wb2_ref, bn_ref[2:3, :], bn_ref[3:4, :],
                          xp2_ref, WC2)
        o_ref[...] = y2   # (N*H, W*C2): lane-dense (128-wide), unmasked stores

    vmem = pl.BlockSpec(memory_space=pltpu.MemorySpace.VMEM)
    out2d = pl.pallas_call(
        kernel,
        out_shape=jax.ShapeDtypeStruct((N * H, WC2), jnp.float32),
        in_specs=[vmem] * 4,
        out_specs=vmem,
        scratch_shapes=[pltpu.VMEM((N, H + 2 * PAD, WC1), jnp.float32),
                        pltpu.VMEM((N, H + 2 * PAD, WC2), jnp.float32)],
    )(x3d, wb1, wb2, bn_pk)

    return out2d.reshape(N, H, W, C2).transpose(0, 3, 1, 2)  # back to NCHW


# ---------------- pure-JAX reference (for correctness check) ----------------
def reference_forward(x, p, bf16_matmul_operands=False):
    """PyTorch-equivalent training-mode forward. With bf16_matmul_operands=True the
    conv operands are rounded to bf16 (f32 accumulate), mirroring the kernel's MXU
    precision exactly."""
    rnd = ((lambda a: a.astype(jnp.bfloat16).astype(jnp.float32))
           if bf16_matmul_operands else (lambda a: a))

    def conv(x, w, b):
        y = lax.conv_general_dilated(
            rnd(x), rnd(w), window_strides=(1, 1), padding=((1, 1), (1, 1)),
            dimension_numbers=("NCHW", "OIHW", "NCHW"),
            precision=lax.Precision.HIGHEST)
        return y + b[None, :, None, None]

    def bn_relu(x, g, beta):
        mean = jnp.mean(x, axis=(0, 2, 3), keepdims=True)
        var = jnp.mean((x - mean) ** 2, axis=(0, 2, 3), keepdims=True)
        y = (x - mean) * lax.rsqrt(var + EPS)
        y = y * g[None, :, None, None] + beta[None, :, None, None]
        return jnp.maximum(y, 0.0)

    y = bn_relu(conv(x, p["w1"], p["b1"]), p["g1"], p["be1"])
    y = bn_relu(conv(y, p["w2"], p["b2"]), p["g2"], p["be2"])
    return y


def init_params(key, in_channels, out_channels):
    ks = jax.random.split(key, 8)
    f32 = jnp.float32
    return {
        "w1": 0.1 * jax.random.normal(ks[0], (out_channels, in_channels, 3, 3), f32),
        "b1": 0.1 * jax.random.normal(ks[1], (out_channels,), f32),
        "g1": 1.0 + 0.1 * jax.random.normal(ks[2], (out_channels,), f32),
        "be1": 0.1 * jax.random.normal(ks[3], (out_channels,), f32),
        "w2": 0.1 * jax.random.normal(ks[4], (out_channels, out_channels, 3, 3), f32),
        "b2": 0.1 * jax.random.normal(ks[5], (out_channels,), f32),
        "g2": 1.0 + 0.1 * jax.random.normal(ks[6], (out_channels,), f32),
        "be2": 0.1 * jax.random.normal(ks[7], (out_channels,), f32),
    }


if __name__ == "__main__":
    key = jax.random.PRNGKey(0)
    k_x, k_p = jax.random.split(key)

    N, Cin, Cout, H, W = 2, 4, 8, 16, 16
    x = jax.random.normal(k_x, (N, Cin, H, W), jnp.float32)
    params = init_params(k_p, Cin, Cout)

    out = jax.block_until_ready(jax.jit(conv_block_forward)(x, params))
    assert out.shape == (N, Cout, H, W), out.shape

    # Tight check against a reference with matched MXU precision (bf16 operands, f32 acc).
    ref_bf16 = jax.block_until_ready(reference_forward(x, params, bf16_matmul_operands=True))
    np.testing.assert_allclose(np.asarray(out), np.asarray(ref_bf16), rtol=1e-4, atol=1e-4)

    # Parity check against the full-f32 module forward; tolerance reflects the
    # intentional bf16 rounding of the conv matmul operands.
    ref_f32 = jax.block_until_ready(reference_forward(x, params))
    np.testing.assert_allclose(np.asarray(out), np.asarray(ref_f32), rtol=5e-2, atol=5e-2)

    print("KERNEL_OK")
</pallas_src>

<mosaic_0001>
module attributes {stable_mosaic.version = 11 : i64} {
  func.func @kernel(%arg0: memref<2x16x64xf32, #tpu.memory_space<vmem>>, %arg1: memref<3x64x128xbf16, #tpu.memory_space<vmem>>, %arg2: memref<3x128x128xbf16, #tpu.memory_space<vmem>>, %arg3: memref<4x128xf32, #tpu.memory_space<vmem>>, %arg4: memref<32x128xf32, #tpu.memory_space<vmem>>, %arg5: memref<2x32x64xf32, #tpu.memory_space<vmem>>, %arg6: memref<2x32x128xf32, #tpu.memory_space<vmem>>) attributes {dimension_semantics = [], scalar_prefetch = 0 : i64, scratch_operands = 2 : i64, tpu.core_type = #tpu.core_type<tc>} {
    %c0 = arith.constant 0 : index
    %c0_0 = arith.constant 0 : index
    %c0_1 = arith.constant 0 : index
    %0 = vector.load %arg0[%c0, %c0_0, %c0_1] : memref<2x16x64xf32, #tpu.memory_space<vmem>>, vector<2x16x64xf32>
    %c0_2 = arith.constant 0 : index
    %c0_3 = arith.constant 0 : index
    %1 = vector.load %arg3[%c0_2, %c0_3] : memref<4x128xf32, #tpu.memory_space<vmem>>, vector<1x128xf32>
    %c1 = arith.constant 1 : index
    %c0_4 = arith.constant 0 : index
    %2 = vector.load %arg3[%c1, %c0_4] : memref<4x128xf32, #tpu.memory_space<vmem>>, vector<1x128xf32>
    %cst = arith.constant 0.000000e+00 : f32
    %3 = vector.broadcast %cst : f32 to vector<2x1x64xf32>
    %c0_5 = arith.constant 0 : index
    %c7 = arith.constant 7 : index
    %c0_6 = arith.constant 0 : index
    %4 = vector.load %arg5[%c0_5, %c7, %c0_6] : memref<2x32x64xf32, #tpu.memory_space<vmem>>, vector<2x1x64xf32>
    tpu.vector_store %arg5[%c0_5, %c7, %c0_6], %3 {strides = array<i32>} : memref<2x32x64xf32, #tpu.memory_space<vmem>>, vector<2x1x64xf32>,
    %cst_7 = arith.constant 0.000000e+00 : f32
    %5 = vector.broadcast %cst_7 : f32 to vector<2x1x64xf32>
    %c0_8 = arith.constant 0 : index
    %c24 = arith.constant 24 : index
    %c0_9 = arith.constant 0 : index
    %6 = vector.load %arg5[%c0_8, %c24, %c0_9] : memref<2x32x64xf32, #tpu.memory_space<vmem>>, vector<2x1x64xf32>
    tpu.vector_store %arg5[%c0_8, %c24, %c0_9], %5 {strides = array<i32>} : memref<2x32x64xf32, #tpu.memory_space<vmem>>, vector<2x1x64xf32>,
    %c0_10 = arith.constant 0 : index
    %c8 = arith.constant 8 : index
    %c0_11 = arith.constant 0 : index
    %7 = vector.load %arg5[%c0_10, %c8, %c0_11] : memref<2x32x64xf32, #tpu.memory_space<vmem>>, vector<2x16x64xf32>
    tpu.vector_store %arg5[%c0_10, %c8, %c0_11], %0 {strides = array<i32>} : memref<2x32x64xf32, #tpu.memory_space<vmem>>, vector<2x16x64xf32>,
    %c0_12 = arith.constant 0 : index
    %c7_13 = arith.constant 7 : index
    %c0_14 = arith.constant 0 : index
    %8 = vector.load %arg5[%c0_12, %c7_13, %c0_14] : memref<2x32x64xf32, #tpu.memory_space<vmem>>, vector<2x16x64xf32>
    %9 = vector.shape_cast %8 : vector<2x16x64xf32> to vector<32x64xf32>
    %10 = arith.truncf %9 : vector<32x64xf32> to vector<32x64xbf16>
    %c0_15 = arith.constant 0 : index
    %c0_16 = arith.constant 0 : index
    %c0_17 = arith.constant 0 : index
    %11 = vector.load %arg1[%c0_15, %c0_16, %c0_17] : memref<3x64x128xbf16, #tpu.memory_space<vmem>>, vector<1x64x128xbf16>
    %12 = vector.shape_cast %11 : vector<1x64x128xbf16> to vector<64x128xbf16>
    %cst_18 = arith.constant dense<0.000000e+00> : vector<32x128xf32>
    %13 = tpu.matmul %10, %12, %cst_18 {dimension_numbers = #tpu.dot_dimension_numbers<[1], [0], [0], [1], [0, 0, 1, 1], [], []>} : vector<32x64xbf16>, vector<64x128xbf16>, vector<32x128xf32> -> vector<32x128xf32>
    %c0_19 = arith.constant 0 : index
    %c8_20 = arith.constant 8 : index
    %c0_21 = arith.constant 0 : index
    %14 = vector.load %arg5[%c0_19, %c8_20, %c0_21] : memref<2x32x64xf32, #tpu.memory_space<vmem>>, vector<2x16x64xf32>
    %15 = vector.shape_cast %14 : vector<2x16x64xf32> to vector<32x64xf32>
    %16 = arith.truncf %15 : vector<32x64xf32> to vector<32x64xbf16>
    %c1_22 = arith.constant 1 : index
    %c0_23 = arith.constant 0 : index
    %c0_24 = arith.constant 0 : index
    %17 = vector.load %arg1[%c1_22, %c0_23, %c0_24] : memref<3x64x128xbf16, #tpu.memory_space<vmem>>, vector<1x64x128xbf16>
    %18 = vector.shape_cast %17 : vector<1x64x128xbf16> to vector<64x128xbf16>
    %cst_25 = arith.constant dense<0.000000e+00> : vector<32x128xf32>
    %19 = tpu.matmul %16, %18, %cst_25 {dimension_numbers = #tpu.dot_dimension_numbers<[1], [0], [0], [1], [0, 0, 1, 1], [], []>} : vector<32x64xbf16>, vector<64x128xbf16>, vector<32x128xf32> -> vector<32x128xf32>
    %20 = arith.addf %13, %19 : vector<32x128xf32>
    %c0_26 = arith.constant 0 : index
    %c9 = arith.constant 9 : index
    %c0_27 = arith.constant 0 : index
    %21 = vector.load %arg5[%c0_26, %c9, %c0_27] : memref<2x32x64xf32, #tpu.memory_space<vmem>>, vector<2x16x64xf32>
    %22 = vector.shape_cast %21 : vector<2x16x64xf32> to vector<32x64xf32>
    %23 = arith.truncf %22 : vector<32x64xf32> to vector<32x64xbf16>
    %c2 = arith.constant 2 : index
    %c0_28 = arith.constant 0 : index
    %c0_29 = arith.constant 0 : index
    %24 = vector.load %arg1[%c2, %c0_28, %c0_29] : memref<3x64x128xbf16, #tpu.memory_space<vmem>>, vector<1x64x128xbf16>
    %25 = vector.shape_cast %24 : vector<1x64x128xbf16> to vector<64x128xbf16>
    %cst_30 = arith.constant dense<0.000000e+00> : vector<32x128xf32>
    %26 = tpu.matmul %23, %25, %cst_30 {dimension_numbers = #tpu.dot_dimension_numbers<[1], [0], [0], [1], [0, 0, 1, 1], [], []>} : vector<32x64xbf16>, vector<64x128xbf16>, vector<32x128xf32> -> vector<32x128xf32>
    %27 = arith.addf %20, %26 : vector<32x128xf32>
    %cst_31 = arith.constant dense<0.000000e+00> : vector<128xf32>
    %28 = vector.multi_reduction <add>, %27, %cst_31 [0] : vector<32x128xf32> to vector<128xf32>
    %29 = vector.shape_cast %28 : vector<128xf32> to vector<1x128xf32>
    %30 = arith.mulf %27, %27 : vector<32x128xf32>
    %cst_32 = arith.constant dense<0.000000e+00> : vector<128xf32>
    %31 = vector.multi_reduction <add>, %30, %cst_32 [0] : vector<32x128xf32> to vector<128xf32>
    %32 = vector.shape_cast %31 : vector<128xf32> to vector<1x128xf32>
    %33 = tpu.concatenate %29, %32 in 0 : vector<1x128xf32>, vector<1x128xf32> -> vector<2x128xf32>
    %c8_i32 = arith.constant 8 : i32
    %34 = tpu.dynamic_rotate %33 by %c8_i32 dim 1 : vector<2x128xf32>, i32 -> vector<2x128xf32>
    %35 = arith.addf %33, %34 : vector<2x128xf32>
    %c16_i32 = arith.constant 16 : i32
    %36 = tpu.dynamic_rotate %35 by %c16_i32 dim 1 : vector<2x128xf32>, i32 -> vector<2x128xf32>
    %37 = arith.addf %35, %36 : vector<2x128xf32>
    %c32_i32 = arith.constant 32 : i32
    %38 = tpu.dynamic_rotate %37 by %c32_i32 dim 1 : vector<2x128xf32>, i32 -> vector<2x128xf32>
    %39 = arith.addf %37, %38 : vector<2x128xf32>
    %c64_i32 = arith.constant 64 : i32
    %40 = tpu.dynamic_rotate %39 by %c64_i32 dim 1 : vector<2x128xf32>, i32 -> vector<2x128xf32>
    %41 = arith.addf %39, %40 : vector<2x128xf32>
    %cst_33 = arith.constant 0.001953125 : f32
    %42 = vector.broadcast %cst_33 : f32 to vector<2x128xf32>
    %43 = arith.mulf %41, %42 : vector<2x128xf32>
    %44 = vector.extract_strided_slice %43 {offsets = [0, 0], sizes = [1, 128], strides = [1, 1]} : vector<2x128xf32> to vector<1x128xf32>
    %45 = vector.extract_strided_slice %43 {offsets = [1, 0], sizes = [1, 128], strides = [1, 1]} : vector<2x128xf32> to vector<1x128xf32>
    %46 = arith.mulf %44, %44 : vector<1x128xf32>
    %47 = arith.subf %45, %46 : vector<1x128xf32>
    %cst_34 = arith.constant 0.000000e+00 : f32
    %48 = vector.broadcast %cst_34 : f32 to vector<1x128xf32>
    %49 = arith.maximumf %47, %48 : vector<1x128xf32>
    %cst_35 = arith.constant 9.99999974E-6 : f32
    %50 = vector.broadcast %cst_35 : f32 to vector<1x128xf32>
    %51 = arith.addf %49, %50 : vector<1x128xf32>
    %52 = math.rsqrt %51 : vector<1x128xf32>
    %53 = arith.mulf %1, %52 : vector<1x128xf32>
    %54 = vector.broadcast %44 : vector<1x128xf32> to vector<32x128xf32>
    %55 = arith.subf %27, %54 : vector<32x128xf32>
    %56 = vector.broadcast %53 : vector<1x128xf32> to vector<32x128xf32>
    %57 = arith.mulf %55, %56 : vector<32x128xf32>
    %58 = vector.broadcast %2 : vector<1x128xf32> to vector<32x128xf32>
    %59 = arith.addf %57, %58 : vector<32x128xf32>
    %cst_36 = arith.constant 0.000000e+00 : f32
    %60 = vector.broadcast %cst_36 : f32 to vector<32x128xf32>
    %61 = arith.maximumf %59, %60 : vector<32x128xf32>
    %62 = vector.shape_cast %61 : vector<32x128xf32> to vector<2x16x128xf32>
    %c2_37 = arith.constant 2 : index
    %c0_38 = arith.constant 0 : index
    %63 = vector.load %arg3[%c2_37, %c0_38] : memref<4x128xf32, #tpu.memory_space<vmem>>, vector<1x128xf32>
    %c3 = arith.constant 3 : index
    %c0_39 = arith.constant 0 : index
    %64 = vector.load %arg3[%c3, %c0_39] : memref<4x128xf32, #tpu.memory_space<vmem>>, vector<1x128xf32>
    %cst_40 = arith.constant 0.000000e+00 : f32
    %65 = vector.broadcast %cst_40 : f32 to vector<2x1x128xf32>
    %c0_41 = arith.constant 0 : index
    %c7_42 = arith.constant 7 : index
    %c0_43 = arith.constant 0 : index
    %66 = vector.load %arg6[%c0_41, %c7_42, %c0_43] : memref<2x32x128xf32, #tpu.memory_space<vmem>>, vector<2x1x128xf32>
    tpu.vector_store %arg6[%c0_41, %c7_42, %c0_43], %65 {strides = array<i32>} : memref<2x32x128xf32, #tpu.memory_space<vmem>>, vector<2x1x128xf32>,
    %cst_44 = arith.constant 0.000000e+00 : f32
    %67 = vector.broadcast %cst_44 : f32 to vector<2x1x128xf32>
    %c0_45 = arith.constant 0 : index
    %c24_46 = arith.constant 24 : index
    %c0_47 = arith.constant 0 : index
    %68 = vector.load %arg6[%c0_45, %c24_46, %c0_47] : memref<2x32x128xf32, #tpu.memory_space<vmem>>, vector<2x1x128xf32>
    tpu.vector_store %arg6[%c0_45, %c24_46, %c0_47], %67 {strides = array<i32>} : memref<2x32x128xf32, #tpu.memory_space<vmem>>, vector<2x1x128xf32>,
    %c0_48 = arith.constant 0 : index
    %c8_49 = arith.constant 8 : index
    %c0_50 = arith.constant 0 : index
    %69 = vector.load %arg6[%c0_48, %c8_49, %c0_50] : memref<2x32x128xf32, #tpu.memory_space<vmem>>, vector<2x16x128xf32>
    tpu.vector_store %arg6[%c0_48, %c8_49, %c0_50], %62 {strides = array<i32>} : memref<2x32x128xf32, #tpu.memory_space<vmem>>, vector<2x16x128xf32>,
    %c0_51 = arith.constant 0 : index
    %c7_52 = arith.constant 7 : index
    %c0_53 = arith.constant 0 : index
    %70 = vector.load %arg6[%c0_51, %c7_52, %c0_53] : memref<2x32x128xf32, #tpu.memory_space<vmem>>, vector<2x16x128xf32>
    %71 = vector.shape_cast %70 : vector<2x16x128xf32> to vector<32x128xf32>
    %72 = arith.truncf %71 : vector<32x128xf32> to vector<32x128xbf16>
    %c0_54 = arith.constant 0 : index
    %c0_55 = arith.constant 0 : index
    %c0_56 = arith.constant 0 : index
    %73 = vector.load %arg2[%c0_54, %c0_55, %c0_56] : memref<3x128x128xbf16, #tpu.memory_space<vmem>>, vector<1x128x128xbf16>
    %74 = vector.shape_cast %73 : vector<1x128x128xbf16> to vector<128x128xbf16>
    %cst_57 = arith.constant dense<0.000000e+00> : vector<32x128xf32>
    %75 = tpu.matmul %72, %74, %cst_57 {dimension_numbers = #tpu.dot_dimension_numbers<[1], [0], [0], [1], [0, 0, 1, 1], [], []>} : vector<32x128xbf16>, vector<128x128xbf16>, vector<32x128xf32> -> vector<32x128xf32>
    %c0_58 = arith.constant 0 : index
    %c8_59 = arith.constant 8 : index
    %c0_60 = arith.constant 0 : index
    %76 = vector.load %arg6[%c0_58, %c8_59, %c0_60] : memref<2x32x128xf32, #tpu.memory_space<vmem>>, vector<2x16x128xf32>
    %77 = vector.shape_cast %76 : vector<2x16x128xf32> to vector<32x128xf32>
    %78 = arith.truncf %77 : vector<32x128xf32> to vector<32x128xbf16>
    %c1_61 = arith.constant 1 : index
    %c0_62 = arith.constant 0 : index
    %c0_63 = arith.constant 0 : index
    %79 = vector.load %arg2[%c1_61, %c0_62, %c0_63] : memref<3x128x128xbf16, #tpu.memory_space<vmem>>, vector<1x128x128xbf16>
    %80 = vector.shape_cast %79 : vector<1x128x128xbf16> to vector<128x128xbf16>
    %cst_64 = arith.constant dense<0.000000e+00> : vector<32x128xf32>
    %81 = tpu.matmul %78, %80, %cst_64 {dimension_numbers = #tpu.dot_dimension_numbers<[1], [0], [0], [1], [0, 0, 1, 1], [], []>} : vector<32x128xbf16>, vector<128x128xbf16>, vector<32x128xf32> -> vector<32x128xf32>
    %82 = arith.addf %75, %81 : vector<32x128xf32>
    %c0_65 = arith.constant 0 : index
    %c9_66 = arith.constant 9 : index
    %c0_67 = arith.constant 0 : index
    %83 = vector.load %arg6[%c0_65, %c9_66, %c0_67] : memref<2x32x128xf32, #tpu.memory_space<vmem>>, vector<2x16x128xf32>
    %84 = vector.shape_cast %83 : vector<2x16x128xf32> to vector<32x128xf32>
    %85 = arith.truncf %84 : vector<32x128xf32> to vector<32x128xbf16>
    %c2_68 = arith.constant 2 : index
    %c0_69 = arith.constant 0 : index
    %c0_70 = arith.constant 0 : index
    %86 = vector.load %arg2[%c2_68, %c0_69, %c0_70] : memref<3x128x128xbf16, #tpu.memory_space<vmem>>, vector<1x128x128xbf16>
    %87 = vector.shape_cast %86 : vector<1x128x128xbf16> to vector<128x128xbf16>
    %cst_71 = arith.constant dense<0.000000e+00> : vector<32x128xf32>
    %88 = tpu.matmul %85, %87, %cst_71 {dimension_numbers = #tpu.dot_dimension_numbers<[1], [0], [0], [1], [0, 0, 1, 1], [], []>} : vector<32x128xbf16>, vector<128x128xbf16>, vector<32x128xf32> -> vector<32x128xf32>
    %89 = arith.addf %82, %88 : vector<32x128xf32>
    %cst_72 = arith.constant dense<0.000000e+00> : vector<128xf32>
    %90 = vector.multi_reduction <add>, %89, %cst_72 [0] : vector<32x128xf32> to vector<128xf32>
    %91 = vector.shape_cast %90 : vector<128xf32> to vector<1x128xf32>
    %92 = arith.mulf %89, %89 : vector<32x128xf32>
    %cst_73 = arith.constant dense<0.000000e+00> : vector<128xf32>
    %93 = vector.multi_reduction <add>, %92, %cst_73 [0] : vector<32x128xf32> to vector<128xf32>
    %94 = vector.shape_cast %93 : vector<128xf32> to vector<1x128xf32>
    %95 = tpu.concatenate %91, %94 in 0 : vector<1x128xf32>, vector<1x128xf32> -> vector<2x128xf32>
    %c8_i32_74 = arith.constant 8 : i32
    %96 = tpu.dynamic_rotate %95 by %c8_i32_74 dim 1 : vector<2x128xf32>, i32 -> vector<2x128xf32>
    %97 = arith.addf %95, %96 : vector<2x128xf32>
    %c16_i32_75 = arith.constant 16 : i32
    %98 = tpu.dynamic_rotate %97 by %c16_i32_75 dim 1 : vector<2x128xf32>, i32 -> vector<2x128xf32>
    %99 = arith.addf %97, %98 : vector<2x128xf32>
    %c32_i32_76 = arith.constant 32 : i32
    %100 = tpu.dynamic_rotate %99 by %c32_i32_76 dim 1 : vector<2x128xf32>, i32 -> vector<2x128xf32>
    %101 = arith.addf %99, %100 : vector<2x128xf32>
    %c64_i32_77 = arith.constant 64 : i32
    %102 = tpu.dynamic_rotate %101 by %c64_i32_77 dim 1 : vector<2x128xf32>, i32 -> vector<2x128xf32>
    %103 = arith.addf %101, %102 : vector<2x128xf32>
    %cst_78 = arith.constant 0.001953125 : f32
    %104 = vector.broadcast %cst_78 : f32 to vector<2x128xf32>
    %105 = arith.mulf %103, %104 : vector<2x128xf32>
    %106 = vector.extract_strided_slice %105 {offsets = [0, 0], sizes = [1, 128], strides = [1, 1]} : vector<2x128xf32> to vector<1x128xf32>
    %107 = vector.extract_strided_slice %105 {offsets = [1, 0], sizes = [1, 128], strides = [1, 1]} : vector<2x128xf32> to vector<1x128xf32>
    %108 = arith.mulf %106, %106 : vector<1x128xf32>
    %109 = arith.subf %107, %108 : vector<1x128xf32>
    %cst_79 = arith.constant 0.000000e+00 : f32
    %110 = vector.broadcast %cst_79 : f32 to vector<1x128xf32>
    %111 = arith.maximumf %109, %110 : vector<1x128xf32>
    %cst_80 = arith.constant 9.99999974E-6 : f32
    %112 = vector.broadcast %cst_80 : f32 to vector<1x128xf32>
    %113 = arith.addf %111, %112 : vector<1x128xf32>
    %114 = math.rsqrt %113 : vector<1x128xf32>
    %115 = arith.mulf %63, %114 : vector<1x128xf32>
    %116 = vector.broadcast %106 : vector<1x128xf32> to vector<32x128xf32>
    %117 = arith.subf %89, %116 : vector<32x128xf32>
    %118 = vector.broadcast %115 : vector<1x128xf32> to vector<32x128xf32>
    %119 = arith.mulf %117, %118 : vector<32x128xf32>
    %120 = vector.broadcast %64 : vector<1x128xf32> to vector<32x128xf32>
    %121 = arith.addf %119, %120 : vector<32x128xf32>
    %cst_81 = arith.constant 0.000000e+00 : f32
    %122 = vector.broadcast %cst_81 : f32 to vector<32x128xf32>
    %123 = arith.maximumf %121, %122 : vector<32x128xf32>
    %c0_82 = arith.constant 0 : index
    %c0_83 = arith.constant 0 : index
    %124 = vector.load %arg4[%c0_82, %c0_83] : memref<32x128xf32, #tpu.memory_space<vmem>>, vector<32x128xf32>
    tpu.vector_store %arg4[%c0_82, %c0_83], %123 {strides = array<i32>} : memref<32x128xf32, #tpu.memory_space<vmem>>, vector<32x128xf32>,
    return
  }
}

</mosaic_0001>

<bundles_post_ra>
// kernel: conv_block_forward.1
= control target key start
LH: loop header
LB: loop body
LE: loop exit
PB: predicated region body
PF: predicated region fallthrough
CT: control target
= control target key end

     0   :  { %vm24_vm0 = vcmask 516096   ;;  %v1150_v1 = vmov 0.0   ;;  %vm29_vm1 = vcmask 523264   ;;  %vm341_vm2 = vcmask 1040384   ;;  %s1152_s20 = smov 16   ;;  %s1153_s21 = smov 32   ;;  %s1380_s1 = inlined_call_operand.vmem [shape: bf16[3,64,128], index: 1, kind: input, shape index: {}]   ;;  %s1381_s0 = inlined_call_operand.vmem [shape: f32[2,16,64], index: 0, kind: input, shape index: {}]   ;;  %s1382_s2 = inlined_call_operand.vmem [shape: bf16[3,128,128], index: 2, kind: input, shape index: {}]   ;;  %s1383_s3 = inlined_call_operand.vmem [shape: f32[4,128], index: 3, kind: input, shape index: {}]   ;;  %s1384_s4 = inlined_call_operand.vmem [shape: f32[32,128], index: 4, kind: output, shape index: {}]  }
   0x1   :  { %v1110_v0 = vld [vmem:[%s1380_s1 + $0x20] sm:$0xff]   ;;  %25 = vst.msk [vmem:[#allocation2 + $0x7] sm:$0x1] %vm24_vm0, %v1150_v1  ;;  %26 = vst.msk [vmem:[#allocation2 + $0x27] sm:$0x1] %vm24_vm0, %v1150_v1  ;;  %v1111_v2 = vld [vmem:[%s1380_s1 + $0x28] sm:$0xff]  }
   0x2   :  { %27 = vst.msk [vmem:[#allocation2 + $0x18] sm:$0x1] %vm24_vm0, %v1150_v1  ;;  %28 = vst.msk [vmem:[#allocation2 + $0x38] sm:$0x1] %vm24_vm0, %v1150_v1  ;;  %993 = vmatprep.subr.bf16.mxu0 %v1110_v0  ;;  %v1112_v3 = vld [vmem:[%s1380_s1 + $0x30] sm:$0xff]   ;;  %v18_v4 = vld [vmem:[%s1381_s0] sm:$0xff] }
   0x3   :  { %398 = vst [vmem:[#allocation3 + $0x7] sm:$0x1] %v1150_v1  ;;  %399 = vst [vmem:[#allocation3 + $0x27] sm:$0x1] %v1150_v1  ;;  %994 = vmatpush3.bf16.msra.mxu0 %v1110_v0  ;;  %v19_v5 = vld [vmem:[%s1381_s0 + $0x8] sm:$0xff]  ;;  %v20_v6 = vld [vmem:[%s1381_s0 + $0x10] sm:$0xff] }
   0x4   :  { %400 = vst [vmem:[#allocation3 + $0x18] sm:$0x1] %v1150_v1  ;;  %401 = vst [vmem:[#allocation3 + $0x38] sm:$0x1] %v1150_v1  ;;  %995 = vmatprep.subr.bf16.mxu0 %v1111_v2  ;;  %v21_v7 = vld [vmem:[%s1381_s0 + $0x18] sm:$0xff]  ;;  %v1114_v9 = vld [vmem:[%s1380_s1] sm:$0xff]  }
   0x5   :  { %30 = vst.msk [vmem:[#allocation2 + $0x8] sm:$0xff] %vm29_vm1, %v18_v4  ;;  %31 = vst.msk [vmem:[#allocation2 + $0x10] sm:$0xff] %vm29_vm1, %v19_v5  ;;  %v1113_v8 = vld [vmem:[%s1380_s1 + $0x38] sm:$0xff]   ;;  %v1115_v19 = vld [vmem:[%s1380_s1 + $0x8] sm:$0xff]   ;;  %s1154_s26 = smov 64  }
   0x6   :  { %32 = vst.msk [vmem:[#allocation2 + $0x28] sm:$0xff] %vm29_vm1, %v20_v6  ;;  %33 = vst.msk [vmem:[#allocation2 + $0x30] sm:$0xff] %vm29_vm1, %v21_v7  ;;  %v1116_v20 = vld [vmem:[%s1380_s1 + $0x10] sm:$0xff]   ;;  %v1117_v21 = vld [vmem:[%s1380_s1 + $0x18] sm:$0xff]  }
   0x7   :  { %996 = vmatpush3.bf16.msra.mxu0 %v1111_v2  ;;  %v1118_v24 = vld [vmem:[%s1380_s1 + $0x40] sm:$0xff]   ;;  %v1119_v29 = vld [vmem:[%s1380_s1 + $0x48] sm:$0xff]   ;;  %v1120_v30 = vld [vmem:[%s1380_s1 + $0x50] sm:$0xff]  }
   0x8   :  { %997 = vmatprep.subr.bf16.mxu0 %v1112_v3  ;;  %v1121_v31 = vld [vmem:[%s1380_s1 + $0x58] sm:$0xff]   ;;  %s1151_s1 = smov 8   ;;  %v1123_v2 = vld [vmem:[%s1382_s2 + $0x40] sm:$0xff]   ;;  %v1125_v5 = vld [vmem:[%s1382_s2 + $0x48] sm:$0xff]  }
   0x9   :  { %v1122_v6 = vld [vmem:[%s1382_s2] sm:$0xff]   ;;  %v1127_v7 = vld [vmem:[%s1382_s2 + $0x50] sm:$0xff]  }
   0xa   :  { %1049 = vmatprep.subr.bf16.mxu1 %v1122_v6 }
   0xb   :  { %998 = vmatpush3.bf16.msra.mxu0 %v1112_v3  ;;  %1050 = vmatpush3.bf16.msra.mxu1 %v1122_v6  ;;  %v1143_v6 = vld [vmem:[%s1382_s2 + $0xa8] sm:$0xff]  }
   0xc   :  { %999 = vmatprep.subr.bf16.mxu0 %v1113_v8  ;;  %v48_v10 = vld [vmem:[#allocation2 + $0x8] sm:$0xff]  ;;  %v49_v11 = vld [vmem:[#allocation2 + $0x10] sm:$0xff] }
   0xd   :  { %v34_v12 = vld [vmem:[#allocation2 + $0x7] sm:$0xff]  ;;  %v52_v13 = vpack.c.bf16 %v49_v11, %v48_v10  ;;  %v35_v15 = vld [vmem:[#allocation2 + $0xf] sm:$0xff] }
   0xe   :  { %v50_v14 = vld [vmem:[#allocation2 + $0x28] sm:$0xff]  ;;  %v51_v16 = vld [vmem:[#allocation2 + $0x30] sm:$0xff]  ;;  %v38_v18 = vpack.c.bf16 %v35_v15, %v34_v12  ;;  %v1131_v11 = vld [vmem:[%s1382_s2 + $0x60] sm:$0xff]  }
   0xf   :  { %1000 = vmatpush3.bf16.msra.mxu0 %v1113_v8  ;;  %1001 = vmatprep.mubr.msk.bf16.mxu0 %vm29_vm1, %v52_v13  ;;  %v53_v17 = vpack.c.bf16 %v51_v16, %v50_v14  ;;  %v36_v22 = vld [vmem:[#allocation2 + $0x27] sm:$0xff]  ;;  %v37_v23 = vld [vmem:[#allocation2 + $0x2f] sm:$0xff]  ;;  %v1128_v12 = vld [vmem:[%s1382_s2 + $0x18] sm:$0xff]  }
  0x10   :  { %1005 = vmatprep.subr.bf16.mxu0 %v1114_v9  ;;  %v221_v25 = vld [vmem:[#allocation2 + $0x9] sm:$0xff]  ;;  %v222_v26 = vld [vmem:[#allocation2 + $0x11] sm:$0xff]  ;;  %v39_v27 = vpack.c.bf16 %v37_v23, %v36_v22  ;;  %v1130_v14 = vld [vmem:[%s1382_s2 + $0x20] sm:$0xff]  }
  0x11   :  { %v225_v28 = vpack.c.bf16 %v222_v26, %v221_v25  ;;  %v223_v32 = vld [vmem:[#allocation2 + $0x29] sm:$0xff]  ;;  %v224_v33 = vld [vmem:[#allocation2 + $0x31] sm:$0xff] }
  0x12   :  { %1002 = vmatmul.mubr.msk.bf16.vlgmr.msra.gmra.mrb[0].mxu0 %vm29_vm1, %v53_v17  ;;  %v226_v34 = vpack.c.bf16 %v224_v33, %v223_v32  ;;  %v1124_v8 = vld [vmem:[%s1382_s2 + $0x8] sm:$0xff]   ;;  %v1126_v10 = vld [vmem:[%s1382_s2 + $0x10] sm:$0xff]   ;;  %v1137_v17 = vld [vmem:[%s1382_s2 + $0x78] sm:$0xff]  }
  0x13   :  { %1006 = vmatpush3.bf16.msra.mxu0 %v1114_v9  ;;  %1013 = vmatprep.mubr.msk.bf16.mxu0 %vm29_vm1, %v38_v18  ;;  %v1129_v9 = vld [vmem:[%s1382_s2 + $0x58] sm:$0xff]   ;;  %v1133_v13 = vld [vmem:[%s1382_s2 + $0x68] sm:$0xff]   ;;  %v1135_v15 = vld [vmem:[%s1382_s2 + $0x70] sm:$0xff]  }
  0x14   :  { %1007 = vmatprep.subr.bf16.mxu0 %v1115_v19  ;;  %1051 = vmatprep.subr.bf16.mxu1 %v1124_v8  ;;  %v1132_v16 = vld [vmem:[%s1382_s2 + $0x28] sm:$0xff]   ;;  %v1134_v18 = vld [vmem:[%s1382_s2 + $0x30] sm:$0xff]   ;;  %v22_v33 = vld [vmem:[%s1383_s3] sm:$0x1] }
  0x15   :  { %1052 = vmatpush3.bf16.msra.mxu1 %v1124_v8  ;;  %v1145_v8 = vld [vmem:[%s1382_s2 + $0xb8] sm:$0xff]  }
  0x16   :  { %1053 = vmatprep.subr.bf16.mxu1 %v1126_v10 }
  0x17   :  { %1008 = vmatpush3.bf16.msra.mxu0 %v1115_v19  ;;  %v1136_v19 = vld [vmem:[%s1382_s2 + $0x38] sm:$0xff]  }
  0x18   :  { %1009 = vmatprep.subr.bf16.mxu0 %v1116_v20 }
  0x19   :  { %1054 = vmatpush3.bf16.msra.mxu1 %v1126_v10 }
  0x1a   :  { %1055 = vmatprep.subr.bf16.mxu1 %v1128_v12 }
  0x1b   :  { %1010 = vmatpush3.bf16.msra.mxu0 %v1116_v20  ;;  %v1138_v20 = vld [vmem:[%s1382_s2 + $0x80] sm:$0xff]  }
  0x1c   :  { %1011 = vmatprep.subr.bf16.mxu0 %v1117_v21 }
  0x1d   :  { %1056 = vmatpush3.bf16.msra.mxu1 %v1128_v12 }
  0x1e   :  { %1057 = vmatprep.subr.bf16.mxu1 %v1130_v14 }
  0x1f   :  { %1012 = vmatpush3.bf16.msra.mxu0 %v1117_v21 }
  0x20   :  { %1017 = vmatprep.subr.bf16.mxu0 %v1118_v24 }
  0x21   :  { %1058 = vmatpush3.bf16.msra.mxu1 %v1130_v14 }
  0x22   :  { %1014 = vmatmul.mubr.msk.bf16.vlgmr.msra.gmra.mrb[0].mxu0 %vm29_vm1, %v39_v27  ;;  %1059 = vmatprep.subr.bf16.mxu1 %v1132_v16 }
  0x23   :  { %1018 = vmatpush3.bf16.msra.mxu0 %v1118_v24  ;;  %1025 = vmatprep.mubr.msk.bf16.mxu0 %vm29_vm1, %v225_v28  ;;  %v368_v28 = vlaneseq }
  0x24   :  { %1019 = vmatprep.subr.bf16.mxu0 %v1119_v29 }
  0x25   :  { %1060 = vmatpush3.bf16.msra.mxu1 %v1132_v16 }
  0x26   :  { %1061 = vmatprep.subr.bf16.mxu1 %v1134_v18 }
  0x27   :  { %1020 = vmatpush3.bf16.msra.mxu0 %v1119_v29 }
  0x28   :  { %1021 = vmatprep.subr.bf16.mxu0 %v1120_v30 }
  0x29   :  { %1062 = vmatpush3.bf16.msra.mxu1 %v1134_v18 }
  0x2a   :  { %1063 = vmatprep.subr.bf16.mxu1 %v1136_v19 }
  0x2b   :  { %1022 = vmatpush3.bf16.msra.mxu0 %v1120_v30  ;;  %v369_v30 = vshrl.u32 %v368_v28, 7 }
  0x2c   :  { %1023 = vmatprep.subr.bf16.mxu0 %v1121_v31 }
  0x2d   :  { %1064 = vmatpush3.bf16.msra.mxu1 %v1136_v19 }
  0x2e   :  { %1069 = vmatprep.subr.bf16.mxu1 %v1138_v20 }
  0x2f   :  { %1024 = vmatpush3.bf16.msra.mxu0 %v1121_v31  ;;  %v1314_v31 = vsub.s32 0, %v369_v30 }
  0x30   :  { %1029 = vmatprep.subr.bf16.mxu0 %v1123_v2 }
  0x32   :  { %1026 = vmatmul.mubr.msk.bf16.vlgmr.msra.gmra.mrb[0].mxu0 %vm29_vm1, %v226_v34 }
  0x33   :  { %1030 = vmatpush3.bf16.msra.mxu0 %v1123_v2 }
  0x34   :  { %1031 = vmatprep.subr.bf16.mxu0 %v1125_v5 }
  0x37   :  { %1032 = vmatpush3.bf16.msra.mxu0 %v1125_v5  ;;  %v1142_v5 = vld [vmem:[%s1382_s2 + $0xa0] sm:$0xff]  }
  0x38   :  { %1033 = vmatprep.subr.bf16.mxu0 %v1127_v7 }
  0x3b   :  { %1034 = vmatpush3.bf16.msra.mxu0 %v1127_v7  ;;  %v1144_v7 = vld [vmem:[%s1382_s2 + $0xb0] sm:$0xff]  }
  0x3c   :  { %1035 = vmatprep.subr.bf16.mxu0 %v1129_v9 }
  0x3f   :  { %1036 = vmatpush3.bf16.msra.mxu0 %v1129_v9 }
  0x40   :  { %1037 = vmatprep.subr.bf16.mxu0 %v1131_v11 }
  0x43   :  { %1038 = vmatpush3.bf16.msra.mxu0 %v1131_v11 }
  0x44   :  { %1039 = vmatprep.subr.bf16.mxu0 %v1133_v13 }
  0x47   :  { %1040 = vmatpush3.bf16.msra.mxu0 %v1133_v13 }
  0x48   :  { %1041 = vmatprep.subr.bf16.mxu0 %v1135_v15 }
  0x4b   :  { %1042 = vmatpush3.bf16.msra.mxu0 %v1135_v15 }
  0x4c   :  { %1043 = vmatprep.subr.bf16.mxu0 %v1137_v17 }
  0x4f   :  { %1044 = vmatpush3.bf16.msra.mxu0 %v1137_v17 }
 0x105   :  { %v1238_v35 = vpop.f32.mrb[0].mxu0 }
 0x106   :  { %v1240_v36 = vpop.f32.mrb[1].mxu0  ;;  %v330_v42 = vmul.f32 %v1238_v35, %v1238_v35 }
 0x107   :  { %v1242_v37 = vpop.f32.mrb[2].mxu0  ;;  %v328_v39 = vmul.f32 %v1240_v36, %v1240_v36 }
 0x108   :  { %v1244_v38 = vpop.f32.mrb[3].mxu0  ;;  %v331_v45 = vmul.f32 %v1242_v37, %v1242_v37 }
 0x109   :  { %v319_v40 = vadd.f32 %v1244_v38, %v1240_v36  ;;  %v329_v41 = vmul.f32 %v1244_v38, %v1244_v38 }
 0x10b   :  { %v320_v43 = vadd.f32 %v1238_v35, %v319_v40  ;;  %v332_v44 = vadd.f32 %v329_v41, %v328_v39 }
 0x10d   :  { %v321_v46 = vadd.f32 %v1242_v37, %v320_v43  ;;  %v333_v47 = vadd.f32 %v332_v44, %v330_v42 }
 0x10f   :  { %v322_v48 = vrot.slane %v321_v46, 4  ;;  %v334_v49 = vadd.f32 %v333_v47, %v331_v45 }
 0x111   :  { %v323_v50 = vadd.f32 %v322_v48, %v321_v46  ;;  %v335_v51 = vrot.slane %v334_v49, 4  ;;  %v887_v46 = vld [vmem:[%s1383_s3 + $0x1] ss:$0 sm:$0xff] }
 0x113   :  { %v324_v52 = vrot.slane %v323_v50, 2  ;;  %v336_v53 = vadd.f32 %v335_v51, %v334_v49 }
 0x115   :  { %v325_v54 = vadd.f32 %v324_v52, %v323_v50  ;;  %v337_v55 = vrot.slane %v336_v53, 2 }
 0x117   :  { %v326_v56 = vrot.slane %v325_v54, 1  ;;  %v338_v57 = vadd.f32 %v337_v55, %v336_v53 }
 0x119   :  { %v339_v58 = vrot.slane %v338_v57, 1  ;;  %v327_v59 = vadd.f32 %v326_v56, %v325_v54 }
 0x11b   :  { %v340_v60 = vadd.f32 %v339_v58, %v338_v57 }
 0x11d   :  { %v342_v61 = vsel %vm341_vm2, %v327_v59, %v340_v60 }
 0x11e   :  { %343 = vrot.lane.b32.xlu0 %v342_v61, %s1151_s1 }
 0x190   :  { %v344_v62 = vpop.permute.xlu0 %343 }
 0x191   :  { %v345_v63 = vadd.f32 %v344_v62, %v342_v61 }
 0x193   :  { %346 = vrot.lane.b32.xlu0 %v345_v63, %s1152_s20 }
 0x205   :  { %v347_v0 = vpop.permute.xlu0 %346 }
 0x206   :  { %v348_v1 = vadd.f32 %v347_v0, %v345_v63 }
 0x208   :  { %349 = vrot.lane.b32.xlu1 %v348_v1, %s1153_s21 }
 0x27a   :  { %v350_v3 = vpop.permute.xlu1 %349 }
 0x27b   :  { %v351_v4 = vadd.f32 %v350_v3, %v348_v1  ;;  %v1139_v1 = vld [vmem:[%s1382_s2 + $0x88] sm:$0xff]   ;;  %v1140_v3 = vld [vmem:[%s1382_s2 + $0x90] sm:$0xff]  }
 0x27d   :  { %352 = vrot.lane.b32.xlu1 %v351_v4, %s1154_s26 }
 0x2ef   :  { %v353_v21 = vpop.permute.xlu1 %352 }
 0x2f0   :  { %v354_v22 = vadd.f32 %v353_v21, %v351_v4  ;;  %v1141_v4 = vld [vmem:[%s1382_s2 + $0x98] sm:$0xff]  }
 0x2f2   :  { %v355_v23 = vmul.f32 0.001953125, %v354_v22 }
 0x2f4   :  { %v356_v24 = vmul.f32 %v355_v23, %v355_v23  ;;  %v371_v34 = vrot.slane %v355_v23, %v1314_v31 }
 0x2f6   :  { %v358_v25 = vrot.slane %v356_v24, 7  ;;  %v372_v41 = vsub.f32 %v1240_v36, %v371_v34  ;;  %v373_v42 = vsub.f32 %v1244_v38, %v371_v34  ;;  %v374_v43 = vsub.f32 %v1238_v35, %v371_v34 }
 0x2f7   :  { %v375_v44 = vsub.f32 %v1242_v37, %v371_v34 }
 0x2f8   :  { %v360_v26 = vsub.f32 %v355_v23, %v358_v25 }
 0x2fa   :  { %v361_v27 = vmax.f32 %v360_v26, 0.0 }
 0x2fc   :  { %v362_v29 = vadd.f32 1e-05, %v361_v27 }
 0x2fe   :  { %1146 = vrsqrt.f32 %v362_v29 }
 0x308   :  { %v1147_v32 = vpop.eup %1146 }
 0x309   :  { %v365_v39 = vrot.slane %v1147_v32, 1 }
 0x30b   :  { %v367_v40 = vmul.f32 %v365_v39, %v22_v33 }
 0x30d   :  { %v379_v45 = vrot.slane %v367_v40, %v1314_v31 }
 0x30f   :  { %v380_v47 = vmul.f32 %v379_v45, %v372_v41  ;;  %v381_v48 = vmul.f32 %v379_v45, %v373_v42  ;;  %v382_v49 = vmul.f32 %v379_v45, %v374_v43  ;;  %v383_v50 = vmul.f32 %v379_v45, %v375_v44 }
 0x311   :  { %v388_v51 = vadd.f32 %v887_v46, %v380_v47  ;;  %v389_v52 = vadd.f32 %v887_v46, %v381_v48  ;;  %v390_v53 = vadd.f32 %v887_v46, %v382_v49  ;;  %v391_v36 = vadd.f32 %v887_v46, %v383_v50 }
 0x313   :  { %v392_v54 = vmax.f32 %v388_v51, 0.0  ;;  %v393_v38 = vmax.f32 %v389_v52, 0.0  ;;  %v394_v55 = vmax.f32 %v390_v53, 0.0  ;;  %v395_v35 = vmax.f32 %v391_v36, 0.0 }
 0x315   :  { %402 = vst [vmem:[#allocation3 + $0x8] sm:$0xff] %v392_v54  ;;  %403 = vst [vmem:[#allocation3 + $0x10] sm:$0xff] %v393_v38  ;;  %v432_v37 = vpack.c.bf16 %v393_v38, %v392_v54  ;;  %v433_v56 = vpack.c.bf16 %v395_v35, %v394_v55 }
 0x316   :  { %404 = vst [vmem:[#allocation3 + $0x28] sm:$0xff] %v394_v55  ;;  %405 = vst [vmem:[#allocation3 + $0x30] sm:$0xff] %v395_v35 }
 0x317   :  { %1045 = vmatprep.mubr.bf16.mxu0 %v432_v37 }
 0x318   :  { %1046 = vmatmul.mubr.bf16.vlgmr.msra.gmra.mrb[4].mxu0 %v433_v56 }
 0x31c   :  { %v406_v57 = vld [vmem:[#allocation3 + $0x7] sm:$0xff]  ;;  %v407_v58 = vld [vmem:[#allocation3 + $0xf] sm:$0xff] }
 0x31d   :  { %v408_v59 = vld [vmem:[#allocation3 + $0x27] sm:$0xff]  ;;  %v410_v60 = vpack.c.bf16 %v407_v58, %v406_v57  ;;  %v409_v61 = vld [vmem:[#allocation3 + $0x2f] sm:$0xff] }
 0x31e   :  { %v645_v62 = vld [vmem:[#allocation3 + $0x9] sm:$0xff]  ;;  %v646_v63 = vld [vmem:[#allocation3 + $0x11] sm:$0xff]  ;;  %v411_v0 = vpack.c.bf16 %v409_v61, %v408_v59 }
 0x31f   :  { %1065 = vmatprep.mubr.bf16.mxu1 %v410_v60  ;;  %v649_v2 = vpack.c.bf16 %v646_v63, %v645_v62  ;;  %v647_v9 = vld [vmem:[#allocation3 + $0x29] sm:$0xff]  ;;  %v648_v10 = vld [vmem:[#allocation3 + $0x31] sm:$0xff]  ;;  %v396_v63 = vld [vmem:[%s1383_s3 + $0x2] sm:$0x1] }
 0x320   :  { %1066 = vmatmul.mubr.bf16.vlgmr.msra.gmra.mrb[0].mxu1 %v411_v0  ;;  %v650_v11 = vpack.c.bf16 %v648_v10, %v647_v9 }
 0x321   :  { %1070 = vmatpush3.bf16.msra.mxu1 %v1138_v20  ;;  %1085 = vmatprep.mubr.bf16.mxu1 %v649_v2 }
 0x322   :  { %1071 = vmatprep.subr.bf16.mxu1 %v1139_v1 }
 0x325   :  { %1072 = vmatpush3.bf16.msra.mxu1 %v1139_v1 }
 0x326   :  { %1073 = vmatprep.subr.bf16.mxu1 %v1140_v3 }
 0x329   :  { %1074 = vmatpush3.bf16.msra.mxu1 %v1140_v3 }
 0x32a   :  { %1075 = vmatprep.subr.bf16.mxu1 %v1141_v4 }
 0x32d   :  { %1076 = vmatpush3.bf16.msra.mxu1 %v1141_v4 }
 0x32e   :  { %1077 = vmatprep.subr.bf16.mxu1 %v1142_v5 }
 0x331   :  { %1078 = vmatpush3.bf16.msra.mxu1 %v1142_v5 }
 0x332   :  { %1079 = vmatprep.subr.bf16.mxu1 %v1143_v6 }
 0x335   :  { %1080 = vmatpush3.bf16.msra.mxu1 %v1143_v6 }
 0x336   :  { %1081 = vmatprep.subr.bf16.mxu1 %v1144_v7 }
 0x339   :  { %1082 = vmatpush3.bf16.msra.mxu1 %v1144_v7 }
 0x33a   :  { %1083 = vmatprep.subr.bf16.mxu1 %v1145_v8 }
 0x33d   :  { %1084 = vmatpush3.bf16.msra.mxu1 %v1145_v8  ;;  %v944_v8 = vld [vmem:[%s1383_s3 + $0x3] ss:$0 sm:$0xff] }
 0x340   :  { %1086 = vmatmul.mubr.bf16.vlgmr.msra.gmra.mrb[0].mxu1 %v650_v11 }
 0x3eb   :  { %v1047_v12 = vpop.f32.mrb[4].mxu0 }
 0x3ec   :  { %v533_v13 = vpop.f32.mrb[5].mxu0 }
 0x3ed   :  { %v1048_v14 = vpop.f32.mrb[6].mxu0 }
 0x3ee   :  { %v536_v15 = vpop.f32.mrb[7].mxu0 }
 0x413   :  { %v1087_v16 = vpop.f32.mrb[0].mxu1 }
 0x414   :  { %v1349_v17 = vadd.f32 %v1087_v16, %v1047_v12  ;;  %v750_v18 = vpop.f32.mrb[1].mxu1 }
 0x415   :  { %v1090_v19 = vadd.f32 %v750_v18, %v533_v13  ;;  %v1088_v20 = vpop.f32.mrb[2].mxu1 }
 0x416   :  { %v1091_v21 = vadd.f32 %v1088_v20, %v1048_v14  ;;  %v753_v22 = vpop.f32.mrb[3].mxu1  ;;  %v780_v27 = vmul.f32 %v1349_v17, %v1349_v17 }
 0x417   :  { %v1092_v23 = vadd.f32 %v753_v22, %v536_v15  ;;  %v778_v24 = vmul.f32 %v1090_v19, %v1090_v19 }
 0x418   :  { %v781_v30 = vmul.f32 %v1091_v21, %v1091_v21 }
 0x419   :  { %v769_v25 = vadd.f32 %v1092_v23, %v1090_v19  ;;  %v779_v26 = vmul.f32 %v1092_v23, %v1092_v23 }
 0x41b   :  { %v770_v28 = vadd.f32 %v1349_v17, %v769_v25  ;;  %v782_v29 = vadd.f32 %v779_v26, %v778_v24 }
 0x41d   :  { %v771_v32 = vadd.f32 %v1091_v21, %v770_v28  ;;  %v783_v33 = vadd.f32 %v782_v29, %v780_v27 }
 0x41f   :  { %v772_v34 = vrot.slane %v771_v32, 4  ;;  %v784_v39 = vadd.f32 %v783_v33, %v781_v30 }
 0x421   :  { %v773_v40 = vadd.f32 %v772_v34, %v771_v32  ;;  %v785_v41 = vrot.slane %v784_v39, 4 }
 0x423   :  { %v774_v42 = vrot.slane %v773_v40, 2  ;;  %v786_v43 = vadd.f32 %v785_v41, %v784_v39 }
 0x425   :  { %v775_v44 = vadd.f32 %v774_v42, %v773_v40  ;;  %v787_v45 = vrot.slane %v786_v43, 2 }
 0x427   :  { %v776_v46 = vrot.slane %v775_v44, 1  ;;  %v788_v47 = vadd.f32 %v787_v45, %v786_v43 }
 0x429   :  { %v789_v48 = vrot.slane %v788_v47, 1  ;;  %v777_v49 = vadd.f32 %v776_v46, %v775_v44 }
 0x42b   :  { %v790_v50 = vadd.f32 %v789_v48, %v788_v47 }
 0x42d   :  { %v791_v51 = vsel %vm341_vm2, %v777_v49, %v790_v50 }
 0x42e   :  { %792 = vrot.lane.b32.xlu0 %v791_v51, %s1151_s1 }
 0x4a0   :  { %v793_v52 = vpop.permute.xlu0 %792 }
 0x4a1   :  { %v794_v53 = vadd.f32 %v793_v52, %v791_v51 }
 0x4a3   :  { %795 = vrot.lane.b32.xlu1 %v794_v53, %s1152_s20 }
 0x515   :  { %v796_v36 = vpop.permute.xlu1 %795 }
 0x516   :  { %v797_v54 = vadd.f32 %v796_v36, %v794_v53 }
 0x518   :  { %798 = vrot.lane.b32.xlu0 %v797_v54, %s1153_s21 }
 0x58a   :  { %v799_v38 = vpop.permute.xlu0 %798 }
 0x58b   :  { %v800_v55 = vadd.f32 %v799_v38, %v797_v54 }
 0x58d   :  { %801 = vrot.lane.b32.xlu1 %v800_v55, %s1154_s26 }
 0x5ff   :  { %v802_v35 = vpop.permute.xlu1 %801 }
 0x600   :  { %v803_v37 = vadd.f32 %v802_v35, %v800_v55 }
 0x602   :  { %v804_v56 = vmul.f32 0.001953125, %v803_v37 }
 0x604   :  { %v805_v57 = vmul.f32 %v804_v56, %v804_v56  ;;  %v820_v0 = vrot.slane %v804_v56, %v1314_v31 }
 0x606   :  { %v807_v58 = vrot.slane %v805_v57, 7  ;;  %v821_v3 = vsub.f32 %v1090_v19, %v820_v0  ;;  %v822_v4 = vsub.f32 %v1092_v23, %v820_v0  ;;  %v823_v5 = vsub.f32 %v1349_v17, %v820_v0 }
 0x607   :  { %v824_v6 = vsub.f32 %v1091_v21, %v820_v0 }
 0x608   :  { %v809_v59 = vsub.f32 %v804_v56, %v807_v58 }
 0x60a   :  { %v810_v60 = vmax.f32 %v809_v59, 0.0 }
 0x60c   :  { %v811_v61 = vadd.f32 1e-05, %v810_v60 }
 0x60e   :  { %1148 = vrsqrt.f32 %v811_v61 }
 0x618   :  { %v1149_v62 = vpop.eup %1148 }
 0x619   :  { %v814_v1 = vrot.slane %v1149_v62, 1 }
 0x61b   :  { %v816_v2 = vmul.f32 %v814_v1, %v396_v63 }
 0x61d   :  { %v828_v7 = vrot.slane %v816_v2, %v1314_v31 }
 0x61f   :  { %v829_v9 = vmul.f32 %v828_v7, %v821_v3  ;;  %v830_v10 = vmul.f32 %v828_v7, %v822_v4  ;;  %v831_v11 = vmul.f32 %v828_v7, %v823_v5  ;;  %v832_v12 = vmul.f32 %v828_v7, %v824_v6 }
 0x621   :  { %v837_v13 = vadd.f32 %v944_v8, %v829_v9  ;;  %v838_v14 = vadd.f32 %v944_v8, %v830_v10  ;;  %v839_v15 = vadd.f32 %v944_v8, %v831_v11  ;;  %v840_v16 = vadd.f32 %v944_v8, %v832_v12 }
 0x623   :  { %v841_v18 = vmax.f32 %v837_v13, 0.0  ;;  %v842_v19 = vmax.f32 %v838_v14, 0.0  ;;  %v843_v20 = vmax.f32 %v839_v15, 0.0  ;;  %v844_v22 = vmax.f32 %v840_v16, 0.0 }
 0x625   :  { %845 = vst [vmem:[%s1384_s4] sm:$0xff] %v841_v18  ;;  %846 = vst [vmem:[%s1384_s4 + $0x8] sm:$0xff] %v842_v19 }
 0x626   :  { %847 = vst [vmem:[%s1384_s4 + $0x10] sm:$0xff] %v843_v20  ;;  %848 = vst [vmem:[%s1384_s4 + $0x18] sm:$0xff] %v844_v22 }

</bundles_post_ra>
